<compile_context>
chip_gen: v7x
topology: tpu7x:2x2x1
jax: 0.10.0
libtpu: 0.0.40
codegen_flags: <defaults>
</compile_context>

<pallas_src>
import math

import numpy as np
import jax
import jax.numpy as jnp
from jax.experimental import pallas as pl
from jax.experimental.pallas import tpu as pltpu

_C1 = np.float32(math.sqrt(2.0 / math.pi))            # sqrt(2/pi)
_C2 = np.float32(math.sqrt(2.0 / math.pi) * 0.044715)  # sqrt(2/pi) * 0.044715


def _gelu_kernel(x_ref, o_ref):
    # Compute in f32 regardless of I/O dtype; store back in the output dtype.
    x = x_ref[...].astype(jnp.float32)
    inner = x * (_C1 + _C2 * (x * x))
    o_ref[...] = (x * (0.5 + 0.5 * jnp.tanh(inner))).astype(o_ref.dtype)


def _choose_lane_width(total: int, hidden: int) -> int:
    """Pick a lane-dense last dim (multiple of 128) that divides `total`."""
    for lw in (4096, 2048, 1024, 512, 256, 128):
        if total % lw == 0:
            return lw
    return hidden  # fall back to the natural hidden dim


def gelu(x: jax.Array, *, target_tile_bytes: int = 2 * 1024 * 1024) -> jax.Array:
    """Tanh-approx GELU (ViT style). Accepts any shape; elementwise."""
    orig_shape = x.shape
    total = int(np.prod(orig_shape)) if orig_shape else 1
    if total == 0:
        return x
    if x.ndim == 0:
        x = x.reshape(1, 1)

    dtype = x.dtype
    itemsize = jnp.dtype(dtype).itemsize
    # Sublane multiple for clean packing: 8 for 32-bit, 16 for 16-bit, 32 for 8-bit.
    sublane = max(8, 32 // itemsize)

    hidden = x.shape[-1]
    lane_width = _choose_lane_width(total, hidden)

    # Free reshape (row-major contiguous) into a lane-dense 2D slab.
    x2d = x.reshape(-1, lane_width)
    rows = x2d.shape[0]
    row_bytes = lane_width * itemsize

    # Size the block by bytes (~2 MiB target), rounded down to a sublane multiple.
    block_rows = target_tile_bytes // row_bytes
    block_rows = max(sublane, (block_rows // sublane) * sublane)
    if block_rows >= rows:
        block_rows = rows  # single full-extent block along rows (always legal)
        # Ensure >= 2 grid blocks when there's enough work to split (v7x: 2 TCs).
        if rows >= 2 * sublane and rows * row_bytes >= 256 * 1024:
            half = -(-(-(-rows // 2)) // sublane) * sublane  # ceil(rows/2) -> sublane mult
            block_rows = min(rows, max(sublane, half))

    grid = (pl.cdiv(rows, block_rows),)
    blk = (block_rows, lane_width)

    out = pl.pallas_call(
        _gelu_kernel,
        out_shape=jax.ShapeDtypeStruct(x2d.shape, dtype),
        grid_spec=pltpu.PrefetchScalarGridSpec(
            num_scalar_prefetch=0,
            grid=grid,
            in_specs=[pl.BlockSpec(blk, lambda i: (i, 0))],
            out_specs=pl.BlockSpec(blk, lambda i: (i, 0)),
        ),
        compiler_params=pltpu.CompilerParams(
            dimension_semantics=("parallel",)),
        cost_estimate=pl.CostEstimate(
            flops=10 * total,
            transcendentals=total,
            bytes_accessed=2 * total * itemsize),
    )(x2d)
    return out.reshape(orig_shape)


def _gelu_ref(x):
    xf = x.astype(jnp.float32)
    y = 0.5 * xf * (1.0 + jnp.tanh(_C1 * (xf + 0.044715 * xf ** 3)))
    return y.astype(x.dtype)


if __name__ == "__main__":
    key = jax.random.PRNGKey(0)
    # ViT-like activation: (batch=2, seq=8, hidden=32)
    x = jax.random.normal(key, (2, 8, 32), dtype=jnp.float32)

    y = jax.block_until_ready(gelu(x))
    y_ref = _gelu_ref(x)

    assert y.shape == x.shape and y.dtype == x.dtype
    np.testing.assert_allclose(np.asarray(y), np.asarray(y_ref), rtol=1e-5, atol=1e-5)

    # Also exercise a ragged / larger shape to cover the cdiv + multi-block path.
    x2 = jax.random.normal(jax.random.PRNGKey(1), (3, 7, 96), dtype=jnp.float32)
    y2 = jax.block_until_ready(gelu(x2))
    np.testing.assert_allclose(np.asarray(y2), np.asarray(_gelu_ref(x2)),
                               rtol=1e-5, atol=1e-5)

    print("KERNEL_OK")
</pallas_src>

<mosaic_0001>
module attributes {stable_mosaic.version = 11 : i64} {
  func.func @_gelu_kernel(%arg0: i32, %arg1: memref<1x512xf32, #tpu.memory_space<vmem>>, %arg2: memref<1x512xf32, #tpu.memory_space<vmem>>) attributes {dimension_semantics = [#tpu.dimension_semantics<parallel>], iteration_bounds = array<i64: 1>, scalar_prefetch = 0 : i64, scratch_operands = 0 : i64, tpu.core_type = #tpu.core_type<tc>, window_params = [{transform_indices = @transform_0, window_bounds = array<i64: 1, 512>}, {transform_indices = @transform_1, window_bounds = array<i64: 1, 512>}]} {
    %c0 = arith.constant 0 : index
    %c0_0 = arith.constant 0 : index
    %0 = vector.load %arg1[%c0, %c0_0] : memref<1x512xf32, #tpu.memory_space<vmem>>, vector<1x512xf32>
    %1 = arith.mulf %0, %0 : vector<1x512xf32>
    %cst = arith.constant 0.0356774069 : f32
    %2 = vector.broadcast %cst : f32 to vector<1x512xf32>
    %3 = arith.mulf %2, %1 : vector<1x512xf32>
    %cst_1 = arith.constant 0.797884583 : f32
    %4 = vector.broadcast %cst_1 : f32 to vector<1x512xf32>
    %5 = arith.addf %4, %3 : vector<1x512xf32>
    %6 = arith.mulf %0, %5 : vector<1x512xf32>
    %7 = math.tanh %6 : vector<1x512xf32>
    %cst_2 = arith.constant 5.000000e-01 : f32
    %8 = vector.broadcast %cst_2 : f32 to vector<1x512xf32>
    %9 = arith.mulf %8, %7 : vector<1x512xf32>
    %cst_3 = arith.constant 5.000000e-01 : f32
    %10 = vector.broadcast %cst_3 : f32 to vector<1x512xf32>
    %11 = arith.addf %10, %9 : vector<1x512xf32>
    %12 = arith.mulf %0, %11 : vector<1x512xf32>
    %c0_4 = arith.constant 0 : index
    %c0_5 = arith.constant 0 : index
    %13 = vector.load %arg2[%c0_4, %c0_5] : memref<1x512xf32, #tpu.memory_space<vmem>>, vector<1x512xf32>
    tpu.vector_store %arg2[%c0_4, %c0_5], %12 {strides = array<i32>} : memref<1x512xf32, #tpu.memory_space<vmem>>, vector<1x512xf32>,
    return
  }
  func.func @transform_0(%arg0: i32) -> (i32, i32) {
    %c0_i32 = arith.constant 0 : i32
    %c0_i32_0 = arith.constant 0 : i32
    return %arg0, %c0_i32 : i32, i32
  }
  func.func @transform_1(%arg0: i32) -> (i32, i32) {
    %c0_i32 = arith.constant 0 : i32
    %c0_i32_0 = arith.constant 0 : i32
    return %arg0, %c0_i32 : i32, i32
  }
}

</mosaic_0001>

<bundles_post_ra>
// kernel: tpu_custom_call.1
= control target key start
LH: loop header
LB: loop body
LE: loop exit
PB: predicated region body
PF: predicated region fallthrough
CT: control target
= control target key end

     0   :  { %6 = vsyncpa [#allocation3], 0  ;;  %s138_s0 = inlined_call_operand.hbm [shape: f32[1,512], index: 0, kind: input, shape index: {}]   ;;  %s139_s1 = inlined_call_operand.hbm [shape: f32[1,512], index: 1, kind: output, shape index: {}]  }
   0x1   :  { %7 = vsyncpa [#allocation4], 0  ;;  %s102_s6 = smov [#allocation2]   ;;  %s54_s10 = scalar_lea.hbm %s138_s0, 64 }
   0x2   :  { %s14_s7 = sshll.u32 %s102_s6, 4  ;;  %p55_p0 = scmp.ne.s32.totalorder %s138_s0, %s54_s10  ;;  %s15_s7 = int_to_ptr.vmem [resolvable:$true] %s14_s7 }
   0x3   :  { %p58_p1 = scmp.lt.u32.totalorder %s54_s10, %s138_s0 }
   0x5   :  { %p60_p2 = pnand %p58_p1, %p55_p0 }
   0x7   :  { %63 = shalt.err (!%p60_p2)
}
   0x8   :  { %s64_s15 = scalar_lea.vmem %s15_s7, 64  ;;  %p69_p4 = scmp.lt.s32.totalorder %s15_s7, %s15_s7 }
   0x9   :  { %p65_p3 = scmp.ne.s32.totalorder %s15_s7, %s64_s15  ;;  %p70_p5 = scmp.lt.s32.totalorder %s64_s15, %s64_s15 }
   0xb   :  { %p71_p6 = por %p70_p5, %p69_p4 }
   0xd   :  { %p72_p7 = pnand %p71_p6, %p65_p3 }
   0xf   :  { %75 = shalt.err (!%p72_p7)
}
  0x10   :  { %17 = dma.hbm_to_vmem [thread:$0]  %s138_s0, 64, %s15_s7, [#allocation3]  }
  0x11   :  { %98 = dma.done.wait [#allocation3], 64  }
  0x12   :  { %99 = vsyncadd [#allocation3], 4294967232  ;;  %v21_v0 = vld [vmem:[#allocation2] sm:$0xf]  ;;  %v30_v6 = vlaneseq  ;;  %s103_s18 = smov [#allocation5]  }
  0x13   :  { %v22_v1 = vmul.f32 %v21_v0, %v21_v0  ;;  %s41_s19 = sshll.u32 %s103_s18, 4  ;;  %s42_s19 = int_to_ptr.vmem [resolvable:$true] %s41_s19 }
  0x14   :  { %vm32_vm0 = vcmp.lt.s32.totalorder %v30_v6, 512  ;;  %s76_s20 = scalar_lea.vmem %s42_s19, 64  ;;  %p81_p9 = scmp.lt.s32.totalorder %s42_s19, %s42_s19 }
  0x15   :  { %v23_v2 = vmul.f32 0.035677407, %v22_v1  ;;  %p77_p8 = scmp.ne.s32.totalorder %s42_s19, %s76_s20  ;;  %p82_p10 = scmp.lt.s32.totalorder %s76_s20, %s76_s20 }
  0x17   :  { %v24_v3 = vadd.f32 0.7978846, %v23_v2  ;;  %p83_p11 = por %p82_p10, %p81_p9 }
  0x19   :  { %v25_v4 = vmul.f32 %v24_v3, %v21_v0  ;;  %p84_p12 = pnand %p83_p11, %p77_p8 }
  0x1b   :  { %52 = vtanh.f32 %v25_v4 }
  0x25   :  { %v53_v5 = vpop.eup %52 }
  0x26   :  { %v27_v7 = vmul.f32 0.5, %v53_v5 }
  0x28   :  { %v28_v8 = vadd.f32 0.5, %v27_v7 }
  0x2a   :  { %v29_v9 = vmul.f32 %v28_v8, %v21_v0 }
  0x2c   :  { %34 = vst.msk [vmem:[#allocation5] sm:$0xf] %vm32_vm0, %v29_v9 }
  0x2d   :  { %87 = shalt.err (!%p84_p12)
}
  0x2e   :  { %s88_s22 = scalar_lea.hbm %s139_s1, 64 }
  0x2f   :  { %p89_p13 = scmp.ne.s32.totalorder %s139_s1, %s88_s22  ;;  %p92_p0 = scmp.lt.u32.totalorder %s88_s22, %s139_s1 }
  0x31   :  { %p94_p1 = pnand %p92_p0, %p89_p13 }
  0x33   :  { %97 = shalt.err (!%p94_p1)
}
  0x34   :  { %44 = dma.vmem_to_hbm [thread:$0]  %s42_s19, 64, %s139_s1, [#allocation4]  }
  0x35   :  { %100 = dma.done.wait [#allocation4], 64  }
  0x36   :  { %101 = vsyncadd [#allocation4], 4294967232 }
  0x37   :  { %48 = vsyncpa [#allocation3], 1 }
  0x38   :  { %49 = vsyncpa [#allocation4], 1 }

</bundles_post_ra>
